<compile_context>
chip_gen: v7x
topology: tpu7x:2x2x1
jax: 0.10.0
libtpu: 0.0.40
codegen_flags: <defaults>
</compile_context>

<pallas_src>
import functools

import jax
import jax.numpy as jnp
from jax.experimental import pallas as pl
from jax.experimental.pallas import tpu as pltpu


def _ne_agn_compute(h, edge_mask, a_node, w, a_src, a_dst, out_ref, alpha):
    """Shared compute body.  `h` is (B, M, Fin); `edge_mask` is a bool array
    broadcastable to (B, M, M); attention vectors are (1, feat) rows."""
    B, M, Fin = h.shape
    Fout = w.shape[1]

    # ---- NodeAttention: softmax(leakyrelu(h . a_node), axis=modalities) ----
    # Scores kept lane-major as (B, M): fast lane reductions, no near-empty
    # (B, M, 1) vregs.
    e_node = jnp.sum(h * a_node[None], axis=-1)                      # (B, M)
    e_node = jnp.where(e_node >= 0, e_node, alpha * e_node)          # leaky relu
    m_n = jnp.max(e_node, axis=-1, keepdims=True)                    # (B, 1)
    p_n = jnp.exp(e_node - m_n)                                      # (B, M)
    inv_n = pl.reciprocal(jnp.sum(p_n, axis=-1, keepdims=True), approx=False)
    att_n = p_n * inv_n                                              # (B, M)
    # TODO(synk): training-mode nn.Dropout on the attention maps is not
    # implemented (eval semantics -> identity).
    weighted_h = h * (att_n[:, :, None] + 1.0)                       # h*att + h

    # ---- Wh: one collapsed 2-D MXU matmul (no per-batch W broadcast) ----
    wh = jnp.dot(weighted_h.reshape(B * M, Fin), w,
                 preferred_element_type=jnp.float32).reshape(B, M, Fout)

    # ---- edge logits: e[b,i,j] = Wh[b,i].a_dst + Wh[b,j].a_src ----
    e_row = jnp.sum(wh * a_dst[None], axis=-1, keepdims=True)        # (B, M, 1) self term
    e_col = jnp.sum(wh * a_src[None], axis=-1)                       # (B, M)   neighbour term
    e = e_row + e_col[:, None, :]                                    # (B, M, M)

    # ---- masked softmax over neighbours, normalized AFTER the matmul ----
    # Keeping the -9e15 fill (rather than hard zeros) preserves the reference /
    # PyTorch behaviour for fully-isolated rows (degenerates to uniform).
    logits = jnp.where(edge_mask, e, jnp.float32(-9e15))             # (B, M, M)
    m_e = jnp.max(logits, axis=-1, keepdims=True)                    # (B, M, 1)
    p_e = jnp.exp(logits - m_e)                                      # unnormalized weights
    inv_e = pl.reciprocal(jnp.sum(p_e, axis=-1, keepdims=True), approx=False)

    if M < 16:
        # Small-M regime: an MxM LHS uses a handful of rows of a 128/256-wide
        # systolic pass; MXU push + result-FIFO pop latency exceeds the useful
        # work.  Unrolled VPU weighted sum over neighbours instead.
        acc = p_e[:, :, 0:1] * wh[:, 0:1, :]                         # (B, M, Fout)
        for j in range(1, M):
            acc = acc + p_e[:, :, j:j + 1] * wh[:, j:j + 1, :]
        h_prime = acc
    else:
        # TODO(synk): optionally cast p_e/wh to bf16 here on v6e/v7x (2x MXU
        # throughput) when the accuracy budget allows.
        h_prime = jnp.einsum('bij,bjg->big', p_e, wh,
                             preferred_element_type=jnp.float32)

    h_prime = h_prime * inv_e                                        # late normalization
    out_ref[...] = jnp.maximum(h_prime, 0.0).astype(out_ref.dtype)   # relu (concat=True)


def _ne_agn_kernel_masked(h_ref, mask_ref, a_node_ref, w_ref, a_src_ref,
                          a_dst_ref, out_ref, *, alpha):
    _ne_agn_compute(h_ref[...], mask_ref[...] != 0, a_node_ref[...], w_ref[...],
                    a_src_ref[...], a_dst_ref[...], out_ref, alpha)


def _ne_agn_kernel_no_self_loops(h_ref, a_node_ref, w_ref, a_src_ref,
                                 a_dst_ref, out_ref, *, alpha):
    # adjGenerator case (ones minus eye): mask built in-register, no adjacency
    # DMA from HBM at all.
    M = h_ref.shape[1]
    row = jax.lax.broadcasted_iota(jnp.int32, (M, M), 0)
    col = jax.lax.broadcasted_iota(jnp.int32, (M, M), 1)
    _ne_agn_compute(h_ref[...], row != col, a_node_ref[...], w_ref[...],
                    a_src_ref[...], a_dst_ref[...], out_ref, alpha)


def ne_agn_forward(h, adj, a_node, w, a_edge, *, alpha=0.2, batch_tiled=None):
    """JAX/Pallas NE_AGN forward (node_att & edge_att on, single head, concat).

    adj:  None   -> complete graph without self loops (mask built in-kernel)
          (M, M) or (B, M, M) -> entries > 0 are edges (converted to an int32
          mask in plain XLA; batch-free masks avoid B*M*M of HBM traffic).
    batch_tiled: force (True) / forbid (False) the 1-D parallel batch grid;
          None picks automatically from a VMEM footprint estimate.
    """
    B, M, Fin = h.shape
    Fout = w.shape[1]

    # Layout plumbing in plain XLA: attention vectors as (1, feat) rows so the
    # kernel only does lane-wise broadcasts (no in-kernel transposes).
    a_node_row = jnp.reshape(a_node, (1, Fin))
    a_src_row = jnp.reshape(a_edge[:Fout], (1, Fout))   # a[:F] -> neighbour (column) term
    a_dst_row = jnp.reshape(a_edge[Fout:], (1, Fout))   # a[F:] -> self (row) term

    mask = None
    if adj is not None:
        # TODO(synk): switch to int8 masks for very large M once the deployment
        # jaxlib handles tiny int8 tiles robustly; int32 is the safe default.
        mask = (adj > 0).astype(jnp.int32)

    # Whole-array (no grid) for tiny problems; 1-D parallel batch grid once the
    # per-invocation VMEM footprint grows (v7x: 64 MiB physical / 32 MiB scoped).
    per_batch_bytes = 4 * (M * Fin + 3 * M * Fout + 3 * M * M)
    if batch_tiled is None:
        batch_tiled = B * per_batch_bytes > (20 << 20)

    out_shape = jax.ShapeDtypeStruct((B, M, Fout), jnp.float32)

    if not batch_tiled:
        if adj is None:
            kernel = functools.partial(_ne_agn_kernel_no_self_loops, alpha=alpha)
            operands = (h, a_node_row, w, a_src_row, a_dst_row)
        else:
            kernel = functools.partial(_ne_agn_kernel_masked, alpha=alpha)
            operands = (h, mask, a_node_row, w, a_src_row, a_dst_row)
        vmem = pltpu.MemorySpace.VMEM
        return pl.pallas_call(
            kernel,
            out_shape=out_shape,
            in_specs=[pl.BlockSpec(memory_space=vmem) for _ in operands],
            out_specs=pl.BlockSpec(memory_space=vmem),
            # Explicit scoped-VMEM limit (v5e's default is only 16 MiB).
            compiler_params=pltpu.CompilerParams(vmem_limit_bytes=32 * 1024 * 1024),
        )(*operands)

    # ---- batch-tiled path: 1-D grid over B, "parallel" for megacore sharding ----
    h_spec = pl.BlockSpec((1, M, Fin), lambda b: (b, 0, 0))
    a_node_spec = pl.BlockSpec((1, Fin), lambda b: (0, 0))
    w_spec = pl.BlockSpec((Fin, Fout), lambda b: (0, 0))
    a_src_spec = pl.BlockSpec((1, Fout), lambda b: (0, 0))
    a_dst_spec = pl.BlockSpec((1, Fout), lambda b: (0, 0))
    out_spec = pl.BlockSpec((1, M, Fout), lambda b: (b, 0, 0))

    if adj is None:
        kernel = functools.partial(_ne_agn_kernel_no_self_loops, alpha=alpha)
        in_specs = [h_spec, a_node_spec, w_spec, a_src_spec, a_dst_spec]
        operands = (h, a_node_row, w, a_src_row, a_dst_row)
    else:
        if mask.ndim == 2:
            mask_spec = pl.BlockSpec((M, M), lambda b: (0, 0))
        else:
            mask_spec = pl.BlockSpec((1, M, M), lambda b: (b, 0, 0))
        kernel = functools.partial(_ne_agn_kernel_masked, alpha=alpha)
        in_specs = [h_spec, mask_spec, a_node_spec, w_spec, a_src_spec, a_dst_spec]
        operands = (h, mask, a_node_row, w, a_src_row, a_dst_row)

    return pl.pallas_call(
        kernel,
        out_shape=out_shape,
        grid=(B,),
        in_specs=in_specs,
        out_specs=out_spec,
        compiler_params=pltpu.CompilerParams(dimension_semantics=("parallel",)),
    )(*operands)


def ne_agn_reference(h, adj, a_node, w, a_edge, alpha=0.2):
    """Pure-JAX reference mirroring the PyTorch module (eval mode)."""
    hp = jax.lax.Precision.HIGHEST
    e = jnp.einsum('bmf,fo->bmo', h, a_node, precision=hp)
    e = jnp.where(e >= 0, e, alpha * e)
    att = jax.nn.softmax(e, axis=1)
    weighted_h = h * att + h
    wh = jnp.einsum('bmf,fg->bmg', weighted_h, w, precision=hp)
    fout = w.shape[1]
    wh1 = jnp.einsum('bmg,go->bmo', wh, a_edge[:fout], precision=hp)   # (B, M, 1)
    wh2 = jnp.einsum('bmg,go->bmo', wh, a_edge[fout:], precision=hp)   # (B, M, 1)
    e2 = jnp.transpose(wh1, (0, 2, 1)) + wh2                           # (B, M, M)
    logits = jnp.where(adj > 0, e2, -9e15)
    attention = jax.nn.softmax(logits, axis=-1)
    h_prime = jnp.einsum('bij,bjg->big', attention, wh, precision=hp)
    return jax.nn.relu(h_prime)


if __name__ == "__main__":
    key = jax.random.PRNGKey(0)
    B, M = 2, 4            # batch, num_modalities
    Fin, Fout = 32, 128    # in_features, out_features (heads=1, multi_head=False)
    k1, k2, k3, k4 = jax.random.split(key, 4)
    h = jax.random.normal(k1, (B, M, Fin), dtype=jnp.float32)
    a_node = 0.1 * jax.random.normal(k2, (Fin, 1), dtype=jnp.float32)
    w = 0.1 * jax.random.normal(k3, (Fin, Fout), dtype=jnp.float32)
    a_edge = 0.1 * jax.random.normal(k4, (2 * Fout, 1), dtype=jnp.float32)

    # Adjacency from the upstream adjGenerator: ones with zero diagonal.
    adj2d = jnp.ones((M, M), jnp.float32) - jnp.eye(M, dtype=jnp.float32)
    adj3d = jnp.broadcast_to(adj2d, (B, M, M))

    ref = ne_agn_reference(h, adj3d, a_node, w, a_edge)

    # (a) adjGenerator constant graph: mask built in-kernel, zero adjacency DMA.
    out_a = jax.block_until_ready(ne_agn_forward(h, None, a_node, w, a_edge))
    # (b) general per-batch adjacency, whole-array (no grid) form.
    out_b = jax.block_until_ready(ne_agn_forward(h, adj3d, a_node, w, a_edge))
    # (c) batch-free mask + 1-D parallel batch grid (the large-shape / v7x form).
    out_c = jax.block_until_ready(
        ne_agn_forward(h, adj2d, a_node, w, a_edge, batch_tiled=True))

    for name, out in (("iota-mask", out_a), ("whole-array", out_b), ("batch-grid", out_c)):
        assert out.shape == (B, M, Fout) and out.dtype == jnp.float32, name
        err = jnp.max(jnp.abs(out - ref))
        assert jnp.allclose(out, ref, rtol=1e-3, atol=1e-3), f"{name}: max abs err {err}"
    print("KERNEL_OK")
</pallas_src>

<mosaic_0001>
module attributes {stable_mosaic.version = 11 : i64} {
  func.func @_ne_agn_kernel_no_self_loops(%arg0: memref<2x4x32xf32, #tpu.memory_space<vmem>>, %arg1: memref<1x32xf32, #tpu.memory_space<vmem>>, %arg2: memref<32x128xf32, #tpu.memory_space<vmem>>, %arg3: memref<1x128xf32, #tpu.memory_space<vmem>>, %arg4: memref<1x128xf32, #tpu.memory_space<vmem>>, %arg5: memref<2x4x128xf32, #tpu.memory_space<vmem>>) attributes {dimension_semantics = [], scalar_prefetch = 0 : i64, scratch_operands = 0 : i64, tpu.core_type = #tpu.core_type<tc>} {
    %0 = tpu.iota {dimensions = array<i32: 0>} : vector<4x4xi32>
    %1 = tpu.iota {dimensions = array<i32: 1>} : vector<4x4xi32>
    %c0 = arith.constant 0 : index
    %c0_0 = arith.constant 0 : index
    %c0_1 = arith.constant 0 : index
    %2 = vector.load %arg0[%c0, %c0_0, %c0_1] : memref<2x4x32xf32, #tpu.memory_space<vmem>>, vector<2x4x32xf32>
    %3 = arith.cmpi ne, %0, %1 : vector<4x4xi32>
    %c0_2 = arith.constant 0 : index
    %c0_3 = arith.constant 0 : index
    %4 = vector.load %arg1[%c0_2, %c0_3] : memref<1x32xf32, #tpu.memory_space<vmem>>, vector<1x32xf32>
    %c0_4 = arith.constant 0 : index
    %c0_5 = arith.constant 0 : index
    %5 = vector.load %arg2[%c0_4, %c0_5] : memref<32x128xf32, #tpu.memory_space<vmem>>, vector<32x128xf32>
    %c0_6 = arith.constant 0 : index
    %c0_7 = arith.constant 0 : index
    %6 = vector.load %arg3[%c0_6, %c0_7] : memref<1x128xf32, #tpu.memory_space<vmem>>, vector<1x128xf32>
    %c0_8 = arith.constant 0 : index
    %c0_9 = arith.constant 0 : index
    %7 = vector.load %arg4[%c0_8, %c0_9] : memref<1x128xf32, #tpu.memory_space<vmem>>, vector<1x128xf32>
    %8 = vector.shape_cast %4 : vector<1x32xf32> to vector<1x1x32xf32>
    %9 = vector.broadcast %8 : vector<1x1x32xf32> to vector<2x4x32xf32>
    %10 = arith.mulf %2, %9 : vector<2x4x32xf32>
    %cst = arith.constant dense<0.000000e+00> : vector<2x4xf32>
    %11 = vector.multi_reduction <add>, %10, %cst [2] : vector<2x4x32xf32> to vector<2x4xf32>
    %cst_10 = arith.constant 0.000000e+00 : f32
    %12 = vector.broadcast %cst_10 : f32 to vector<2x4xf32>
    %13 = arith.cmpf oge, %11, %12 : vector<2x4xf32>
    %cst_11 = arith.constant 2.000000e-01 : f32
    %14 = vector.broadcast %cst_11 : f32 to vector<2x4xf32>
    %15 = arith.mulf %14, %11 : vector<2x4xf32>
    %16 = arith.select %13, %11, %15 : vector<2x4xi1>, vector<2x4xf32>
    %cst_12 = arith.constant dense<0xFF800000> : vector<2xf32>
    %17 = vector.multi_reduction <maximumf>, %16, %cst_12 [1] : vector<2x4xf32> to vector<2xf32>
    %18 = vector.shape_cast %17 : vector<2xf32> to vector<2x1xf32>
    %19 = vector.broadcast %18 : vector<2x1xf32> to vector<2x4xf32>
    %20 = arith.subf %16, %19 : vector<2x4xf32>
    %21 = math.exp %20 : vector<2x4xf32>
    %cst_13 = arith.constant dense<0.000000e+00> : vector<2xf32>
    %22 = vector.multi_reduction <add>, %21, %cst_13 [1] : vector<2x4xf32> to vector<2xf32>
    %23 = vector.shape_cast %22 : vector<2xf32> to vector<2x1xf32>
    %24 = tpu.reciprocal %23 : vector<2x1xf32> -> vector<2x1xf32>
    %25 = vector.broadcast %24 : vector<2x1xf32> to vector<2x4xf32>
    %26 = arith.mulf %21, %25 : vector<2x4xf32>
    %27 = vector.shape_cast %26 : vector<2x4xf32> to vector<2x4x1xf32>
    %cst_14 = arith.constant 1.000000e+00 : f32
    %28 = vector.broadcast %cst_14 : f32 to vector<2x4x1xf32>
    %29 = arith.addf %27, %28 : vector<2x4x1xf32>
    %30 = vector.broadcast %29 : vector<2x4x1xf32> to vector<2x4x32xf32>
    %31 = arith.mulf %2, %30 : vector<2x4x32xf32>
    %32 = vector.shape_cast %31 : vector<2x4x32xf32> to vector<8x32xf32>
    %cst_15 = arith.constant dense<0.000000e+00> : vector<8x128xf32>
    %33 = tpu.matmul %32, %5, %cst_15 {dimension_numbers = #tpu.dot_dimension_numbers<[1], [0], [0], [1], [0, 0, 1, 1], [], []>} : vector<8x32xf32>, vector<32x128xf32>, vector<8x128xf32> -> vector<8x128xf32>
    %34 = vector.shape_cast %33 : vector<8x128xf32> to vector<2x4x128xf32>
    %35 = vector.shape_cast %7 : vector<1x128xf32> to vector<1x1x128xf32>
    %36 = vector.broadcast %35 : vector<1x1x128xf32> to vector<2x4x128xf32>
    %37 = arith.mulf %34, %36 : vector<2x4x128xf32>
    %cst_16 = arith.constant dense<0.000000e+00> : vector<2x4xf32>
    %38 = vector.multi_reduction <add>, %37, %cst_16 [2] : vector<2x4x128xf32> to vector<2x4xf32>
    %39 = vector.shape_cast %38 : vector<2x4xf32> to vector<2x4x1xf32>
    %40 = vector.shape_cast %6 : vector<1x128xf32> to vector<1x1x128xf32>
    %41 = vector.broadcast %40 : vector<1x1x128xf32> to vector<2x4x128xf32>
    %42 = arith.mulf %34, %41 : vector<2x4x128xf32>
    %cst_17 = arith.constant dense<0.000000e+00> : vector<2x4xf32>
    %43 = vector.multi_reduction <add>, %42, %cst_17 [2] : vector<2x4x128xf32> to vector<2x4xf32>
    %44 = vector.shape_cast %43 : vector<2x4xf32> to vector<2x1x4xf32>
    %45 = vector.broadcast %39 : vector<2x4x1xf32> to vector<2x4x4xf32>
    %46 = vector.broadcast %44 : vector<2x1x4xf32> to vector<2x4x4xf32>
    %47 = arith.addf %45, %46 : vector<2x4x4xf32>
    %cst_18 = arith.constant -9.000000e+15 : f32
    %48 = vector.shape_cast %3 : vector<4x4xi1> to vector<1x4x4xi1>
    %49 = vector.broadcast %48 : vector<1x4x4xi1> to vector<2x4x4xi1>
    %50 = vector.broadcast %cst_18 : f32 to vector<2x4x4xf32>
    %51 = arith.select %49, %47, %50 : vector<2x4x4xi1>, vector<2x4x4xf32>
    %cst_19 = arith.constant dense<0xFF800000> : vector<2x4xf32>
    %52 = vector.multi_reduction <maximumf>, %51, %cst_19 [2] : vector<2x4x4xf32> to vector<2x4xf32>
    %53 = vector.shape_cast %52 : vector<2x4xf32> to vector<2x4x1xf32>
    %54 = vector.broadcast %53 : vector<2x4x1xf32> to vector<2x4x4xf32>
    %55 = arith.subf %51, %54 : vector<2x4x4xf32>
    %56 = math.exp %55 : vector<2x4x4xf32>
    %cst_20 = arith.constant dense<0.000000e+00> : vector<2x4xf32>
    %57 = vector.multi_reduction <add>, %56, %cst_20 [2] : vector<2x4x4xf32> to vector<2x4xf32>
    %58 = vector.shape_cast %57 : vector<2x4xf32> to vector<2x4x1xf32>
    %59 = tpu.reciprocal %58 : vector<2x4x1xf32> -> vector<2x4x1xf32>
    %60 = vector.extract_strided_slice %56 {offsets = [0, 0, 0], sizes = [2, 4, 1], strides = [1, 1, 1]} : vector<2x4x4xf32> to vector<2x4x1xf32>
    %61 = vector.extract_strided_slice %34 {offsets = [0, 0, 0], sizes = [2, 1, 128], strides = [1, 1, 1]} : vector<2x4x128xf32> to vector<2x1x128xf32>
    %62 = vector.broadcast %60 : vector<2x4x1xf32> to vector<2x4x128xf32>
    %63 = vector.broadcast %61 : vector<2x1x128xf32> to vector<2x4x128xf32>
    %64 = arith.mulf %62, %63 : vector<2x4x128xf32>
    %65 = vector.extract_strided_slice %56 {offsets = [0, 0, 1], sizes = [2, 4, 1], strides = [1, 1, 1]} : vector<2x4x4xf32> to vector<2x4x1xf32>
    %66 = vector.extract_strided_slice %34 {offsets = [0, 1, 0], sizes = [2, 1, 128], strides = [1, 1, 1]} : vector<2x4x128xf32> to vector<2x1x128xf32>
    %67 = vector.broadcast %65 : vector<2x4x1xf32> to vector<2x4x128xf32>
    %68 = vector.broadcast %66 : vector<2x1x128xf32> to vector<2x4x128xf32>
    %69 = arith.mulf %67, %68 : vector<2x4x128xf32>
    %70 = arith.addf %64, %69 : vector<2x4x128xf32>
    %71 = vector.extract_strided_slice %56 {offsets = [0, 0, 2], sizes = [2, 4, 1], strides = [1, 1, 1]} : vector<2x4x4xf32> to vector<2x4x1xf32>
    %72 = vector.extract_strided_slice %34 {offsets = [0, 2, 0], sizes = [2, 1, 128], strides = [1, 1, 1]} : vector<2x4x128xf32> to vector<2x1x128xf32>
    %73 = vector.broadcast %71 : vector<2x4x1xf32> to vector<2x4x128xf32>
    %74 = vector.broadcast %72 : vector<2x1x128xf32> to vector<2x4x128xf32>
    %75 = arith.mulf %73, %74 : vector<2x4x128xf32>
    %76 = arith.addf %70, %75 : vector<2x4x128xf32>
    %77 = vector.extract_strided_slice %56 {offsets = [0, 0, 3], sizes = [2, 4, 1], strides = [1, 1, 1]} : vector<2x4x4xf32> to vector<2x4x1xf32>
    %78 = vector.extract_strided_slice %34 {offsets = [0, 3, 0], sizes = [2, 1, 128], strides = [1, 1, 1]} : vector<2x4x128xf32> to vector<2x1x128xf32>
    %79 = vector.broadcast %77 : vector<2x4x1xf32> to vector<2x4x128xf32>
    %80 = vector.broadcast %78 : vector<2x1x128xf32> to vector<2x4x128xf32>
    %81 = arith.mulf %79, %80 : vector<2x4x128xf32>
    %82 = arith.addf %76, %81 : vector<2x4x128xf32>
    %83 = vector.broadcast %59 : vector<2x4x1xf32> to vector<2x4x128xf32>
    %84 = arith.mulf %82, %83 : vector<2x4x128xf32>
    %cst_21 = arith.constant 0.000000e+00 : f32
    %85 = vector.broadcast %cst_21 : f32 to vector<2x4x128xf32>
    %86 = arith.maximumf %84, %85 : vector<2x4x128xf32>
    %c0_22 = arith.constant 0 : index
    %c0_23 = arith.constant 0 : index
    %c0_24 = arith.constant 0 : index
    %87 = vector.load %arg5[%c0_22, %c0_23, %c0_24] : memref<2x4x128xf32, #tpu.memory_space<vmem>>, vector<2x4x128xf32>
    tpu.vector_store %arg5[%c0_22, %c0_23, %c0_24], %86 {strides = array<i32>} : memref<2x4x128xf32, #tpu.memory_space<vmem>>, vector<2x4x128xf32>,
    return
  }
}

</mosaic_0001>

<bundles_post_ra>
// kernel: tpu_custom_call.1
= control target key start
LH: loop header
LB: loop body
LE: loop exit
PB: predicated region body
PF: predicated region fallthrough
CT: control target
= control target key end

     0   :  { %10 = vsyncpa [#allocation3], 0  ;;  %s719_s0 = inlined_call_operand.hbm [shape: f32[2,4,32], index: 0, kind: input, shape index: {}]   ;;  %s720_s1 = inlined_call_operand.vmem [shape: f32[1,32], index: 1, kind: input, shape index: {}]   ;;  %s721_s2 = inlined_call_operand.hbm [shape: f32[32,128], index: 2, kind: input, shape index: {}]   ;;  %s722_s3 = inlined_call_operand.vmem [shape: f32[1,128], index: 3, kind: input, shape index: {}]   ;;  %s723_s4 = inlined_call_operand.vmem [shape: f32[1,128], index: 4, kind: input, shape index: {}]   ;;  %s724_s5 = inlined_call_operand.hbm [shape: f32[2,4,128], index: 5, kind: output, shape index: {}]  }
   0x1   :  { %11 = vsyncpa [#allocation6], 0 }
   0x2   :  { %12 = vsyncpa [#allocation4], 0  ;;  %s558_s18 = smov [#allocation2]   ;;  %s486_s22 = scalar_lea.hbm %s719_s0, 128 }
   0x3   :  { %s18_s19 = sshll.u32 %s558_s18, 4  ;;  %p487_p0 = scmp.ne.s32.totalorder %s719_s0, %s486_s22  ;;  %s19_s19 = int_to_ptr.vmem [resolvable:$true] %s18_s19 }
   0x4   :  { %p490_p1 = scmp.lt.u32.totalorder %s486_s22, %s719_s0 }
   0x6   :  { %p492_p2 = pnand %p490_p1, %p487_p0 }
   0x8   :  { %495 = shalt.err (!%p492_p2)
}
   0x9   :  { %s496_s27 = scalar_lea.vmem %s19_s19, 128  ;;  %p501_p4 = scmp.lt.s32.totalorder %s19_s19, %s19_s19 }
   0xa   :  { %p497_p3 = scmp.ne.s32.totalorder %s19_s19, %s496_s27  ;;  %p502_p5 = scmp.lt.s32.totalorder %s496_s27, %s496_s27 }
   0xc   :  { %p503_p6 = por %p502_p5, %p501_p4 }
   0xe   :  { %p504_p7 = pnand %p503_p6, %p497_p3 }
  0x10   :  { %507 = shalt.err (!%p504_p7)
}
  0x11   :  { %s559_s28 = smov 64   ;;  %s560_s29 = smov 4  }
  0x12   :  { %24 = dma.hbm_to_vmem [thread:$0]  %s719_s0, 128, %s19_s19, [#allocation3], %s559_s28, %s559_s28, %s560_s29  }
  0x13   :  { %s561_s7 = smov [#allocation5]   ;;  %s508_s11 = scalar_lea.hbm %s721_s2, 512 }
  0x14   :  { %s32_s8 = sshll.u32 %s561_s7, 4  ;;  %p509_p8 = scmp.ne.s32.totalorder %s721_s2, %s508_s11  ;;  %s33_s8 = int_to_ptr.vmem [resolvable:$true] %s32_s8 }
  0x15   :  { %p512_p9 = scmp.lt.u32.totalorder %s508_s11, %s721_s2 }
  0x17   :  { %p514_p10 = pnand %p512_p9, %p509_p8 }
  0x19   :  { %517 = shalt.err (!%p514_p10)
}
  0x1a   :  { %s518_s16 = scalar_lea.vmem %s33_s8, 512  ;;  %p523_p12 = scmp.lt.s32.totalorder %s33_s8, %s33_s8 }
  0x1b   :  { %p519_p11 = scmp.ne.s32.totalorder %s33_s8, %s518_s16  ;;  %p524_p13 = scmp.lt.s32.totalorder %s518_s16, %s518_s16 }
  0x1d   :  { %p525_p0 = por %p524_p13, %p523_p12 }
  0x1f   :  { %p526_p1 = pnand %p525_p0, %p519_p11 }
  0x21   :  { %529 = shalt.err (!%p526_p1)
}
  0x22   :  { %s562_s0 = smov 128   ;;  %s563_s17 = smov 8  }
  0x23   :  { %38 = dma.hbm_to_vmem [thread:$0]  %s721_s2, 512, %s33_s8, [#allocation6], %s562_s0, %s562_s0, %s563_s17  }
  0x24   :  { %552 = dma.done.wait [#allocation3], 128  }
  0x25   :  { %553 = vsyncadd [#allocation3], 4294967168 }
  0x26   :  { %554 = dma.done.wait [#allocation6], 512  }
  0x27   :  { %555 = vsyncadd [#allocation6], 4294966784  ;;  %vm71_vm0 = vcmask 257024   ;;  %v629_v0 = vld [vmem:[#allocation2] sm:$0xf]  ;;  %v49_v7 = vlaneseq  ;;  %vm94_vm3 = vcmask 1041409  }
  0x28   :  { %v424_v1 = vld [vmem:[%s720_s1] ss:$0 sm:$0xff]  ;;  %v634_v2 = vld [vmem:[#allocation2 + $0x4] sm:$0xf]  ;;  %vm97_vm4 = vcmask 25600   ;;  %v564_v21 = vmov 0  }
  0x29   :  { %v69_v3 = vmul.f32 %v424_v1, %v629_v0  ;;  %v70_v4 = vmul.f32 %v424_v1, %v634_v2  ;;  %v638_v8 = vshrl.u32 %v49_v7, 7  ;;  %v640_v9 = vand.u32 127, %v49_v7  ;;  %465 = vset.pattern.permute.xlu0 %v564_v21  ;;  %464 = vset.pattern.permute.xlu1 %v564_v21  ;;  %v57_v46 = vld [vmem:[#allocation5] sm:$0xff]  ;;  %v58_v47 = vld [vmem:[#allocation5 + $0x8] sm:$0xff]  ;;  %v59_v51 = vld [vmem:[#allocation5 + $0x10] sm:$0xff] }
  0x2a   :  { %v445_v48 = vpack.c.bf16 %v58_v47, %v57_v46  ;;  %v565_v49 = vmov 0.0|0.0   ;;  %v60_v52 = vld [vmem:[#allocation5 + $0x18] sm:$0xff]  ;;  %vm566_vm5 = vmmov 0   ;;  %v567_v54 = vmov 0.0  }
  0x2b   :  { %v72_v5 = vsel %vm71_vm0, %v69_v3, 0.0  ;;  %v75_v6 = vsel %vm71_vm0, %v70_v4, 0.0  ;;  %v644_v12 = vsub.s32 %v640_v9, %v638_v8  ;;  %v651_v22 = vsub.s32 0, %v638_v8  ;;  %444 = vmatprep.subr.bf16.mxu0 %v565_v49  ;;  %441 = vmatprep.mubr.msk.f32.mxu0 %vm566_vm5, %v567_v54  ;;  %v427_v60 = vld [vmem:[%s722_s3] ss:$0 sm:$0xff]  ;;  %s571_s3 = smov [#allocation7]  }
  0x2c   :  { %73 = vadd.xlane.f32.xlu0 %v72_v5  ;;  %v654_v23 = vsub.s32 1, %v638_v8  ;;  %446 = vmatpush3.bf16.msra.mxu0 %v445_v48  ;;  %v448_v53 = vpack.c.bf16 %v60_v52, %v59_v51  ;;  %vm170_vm6 = vcmask 261120   ;;  %vm254_vm7 = vcmask 1043456   ;;  %v426_v62 = vld [vmem:[%s723_s4] ss:$0 sm:$0xff]  ;;  %s411_s4 = sshll.u32 %s571_s3, 4  ;;  %s412_s4 = int_to_ptr.vmem [resolvable:$true] %s411_s4 }
  0x2d   :  { %447 = vmatprep.subr.bf16.mxu0 %v565_v49  ;;  %vm55_vm8 = vcmp.ne.s32.totalorder %v638_v8, %v640_v9  ;;  %vm299_vm9 = vcmask 27648   ;;  %v390_v46 = vsub.s32 3, %v638_v8  ;;  %s530_s24 = scalar_lea.vmem %s412_s4, 128  ;;  %p535_p3 = scmp.lt.s32.totalorder %s412_s4, %s412_s4 }
  0x2e   :  { %p531_p2 = scmp.ne.s32.totalorder %s412_s4, %s530_s24  ;;  %p536_p4 = scmp.lt.s32.totalorder %s530_s24, %s530_s24 }
  0x30   :  { %76 = vadd.xlane.f32.xlu0 %v75_v6  ;;  %449 = vmatpush3.bf16.msra.mxu0 %v448_v53  ;;  %p537_p5 = por %p536_p4, %p535_p3 }
  0x32   :  { %p538_p6 = pnand %p537_p5, %p531_p2 }
  0xb9   :  { %v74_v10 = vpop.xlane.xlu0 %73 }
  0xba   :  { %v80_v11 = vmul.f32 0.2, %v74_v10  ;;  %vm78_vm1 = vcmp.ge.f32.partialorder %v74_v10, 0.0 }
  0xbc   :  { %v82_v14 = vsel %vm78_vm1, %v74_v10, %v80_v11 }
  0xbd   :  { %v77_v13 = vpop.xlane.xlu0 %76  ;;  %v89_v17 = vrot.slane %v82_v14, %v644_v12 }
  0xbe   :  { %vm79_vm2 = vcmp.ge.f32.partialorder %v77_v13, 0.0  ;;  %v81_v15 = vmul.f32 0.2, %v77_v13 }
  0xc0   :  { %v83_v16 = vsel %vm79_vm2, %v77_v13, %v81_v15 }
  0xc1   :  { %v93_v18 = vrot.slane %v83_v16, %v644_v12 }
  0xc3   :  { %v95_v19 = vsel %vm94_vm3, %v93_v18, %v89_v17 }
  0xc4   :  { %v98_v20 = vsel %vm97_vm4, %v95_v19, -inf }
  0xc5   :  { %99 = vmax.xlane.f32.xlu1 %v98_v20 }
 0x152   :  { %v100_v24 = vpop.xlane.xlu1 %99 }
 0x153   :  { %v105_v25 = vrot.slane %v100_v24, %v651_v22  ;;  %v109_v26 = vrot.slane %v100_v24, %v654_v23 }
 0x155   :  { %v112_v27 = vsub.f32 %v82_v14, %v105_v25  ;;  %v113_v28 = vsub.f32 %v83_v16, %v109_v26 }
 0x157   :  { %v114_v29 = vmul.f32 1.442695, %v112_v27  ;;  %v116_v30 = vmul.f32 1.442695, %v113_v28 }
 0x159   :  { %472 = vpow2.f32 %v114_v29 }
 0x15a   :  { %474 = vpow2.f32 %v116_v30 }
 0x163   :  { %v473_v31 = vpop.eup %472 }
 0x164   :  { %v475_v32 = vpop.eup %474  ;;  %121 = vperm.xlu1 %464, %v473_v31  }
 0x165   :  { %124 = vperm.xlu0 %465, %v475_v32  }
 0x1e3   :  { %v122_v33 = vpop.permute.xlu1 %121 }
 0x1e4   :  { %v125_v34 = vpop.permute.xlu0 %124  ;;  %v129_v35 = vrot.slane %v122_v33, %v644_v12  ;;  %v569_v33 = vmov 2  }
 0x1e5   :  { %v133_v36 = vrot.slane %v125_v34, %v644_v12  ;;  %v570_v34 = vmov 3  }
 0x1e7   :  { %v134_v37 = vsel %vm94_vm3, %v133_v36, %v129_v35 }
 0x1e8   :  { %v136_v38 = vsel %vm97_vm4, %v134_v37, 0.0 }
 0x1e9   :  { %137 = vadd.xlane.f32.xlu1 %v136_v38 }
 0x276   :  { %v138_v39 = vpop.xlane.xlu1 %137 }
 0x277   :  { %476 = vrcp.f32 %v138_v39 }
 0x281   :  { %v477_v40 = vpop.eup %476 }
 0x282   :  { %v144_v41 = vrot.slane %v477_v40, %v651_v22  ;;  %v148_v42 = vrot.slane %v477_v40, %v654_v23  ;;  %v370_v40 = vsub.s32 2, %v638_v8 }
 0x284   :  { %v151_v43 = vmul.f32 %v473_v31, %v144_v41  ;;  %v152_v45 = vmul.f32 %v475_v32, %v148_v42  ;;  %v568_v32 = vmov 1  }
 0x286   :  { %v153_v44 = vadd.f32 1.0, %v151_v43  ;;  %v154_v50 = vadd.f32 1.0, %v152_v45 }
 0x288   :  { %157 = vperm.xlu0 %465, %v153_v44  }
 0x28c   :  { %162 = vperm.xlu0 %465, %v154_v50  }
 0x307   :  { %v158_v55 = vpop.permute.xlu0 %157 }
 0x308   :  { %v165_v57 = vmul.f32 %v158_v55, %v629_v0 }
 0x30b   :  { %v163_v56 = vpop.permute.xlu0 %162 }
 0x30c   :  { %v166_v58 = vmul.f32 %v163_v56, %v634_v2 }
 0x30e   :  { %v169_v59 = vcombine.low %v165_v57, %v166_v58 }
 0x310   :  { %442 = vmatmul.mubr.msk.f32.vlgmr.msra.gmra.mrb[0].mxu0 %vm170_vm6, %v169_v59 }
 0x3e3   :  { %v669_v61 = vpop.f32.mrb[0].mxu0 }
 0x3e4   :  { %v676_v63 = vcombine.high %v669_v61, %v669_v61  ;;  %v443_v0 = vpop.f32.mrb[1].mxu0  ;;  %v267_v1 = vmul.f32 %v427_v60, %v669_v61  ;;  %v252_v4 = vmul.f32 %v426_v62, %v669_v61  ;;  %v351_v42 = vrot.slane %v669_v61, %v654_v23 }
 0x3e5   :  { %v333_v43 = vrot.slane %v669_v61, %v651_v22  ;;  %v371_v45 = vrot.slane %v669_v61, %v370_v40  ;;  %v391_v51 = vrot.slane %v669_v61, %v390_v46 }
 0x3e6   :  { %v269_v2 = vsel %vm254_vm7, %v267_v1, 0.0  ;;  %v268_v3 = vmul.f32 %v427_v60, %v676_v63  ;;  %v255_v6 = vsel %vm254_vm7, %v252_v4, 0.0  ;;  %v253_v7 = vmul.f32 %v426_v62, %v676_v63 }
 0x3e7   :  { %270 = vadd.xlane.f32.xlu1 %v269_v2  ;;  %v355_v60 = vrot.slane %v676_v63, %v654_v23  ;;  %v337_v8 = vrot.slane %v676_v63, %v651_v22  ;;  %v375_v2 = vrot.slane %v676_v63, %v370_v40  ;;  %v395_v4 = vrot.slane %v676_v63, %v390_v46 }
 0x3e8   :  { %v272_v5 = vsel %vm254_vm7, %v268_v3, 0.0  ;;  %v258_v10 = vsel %vm254_vm7, %v253_v7, 0.0 }
 0x3e9   :  { %273 = vadd.xlane.f32.xlu0 %v272_v5 }
 0x3eb   :  { %256 = vadd.xlane.f32.xlu1 %v255_v6 }
 0x3ef   :  { %259 = vadd.xlane.f32.xlu1 %v258_v10 }
 0x474   :  { %v271_v11 = vpop.xlane.xlu1 %270 }
 0x475   :  { %v280_v13 = vrot.slane %v271_v11, %v644_v12 }
 0x476   :  { %v274_v14 = vpop.xlane.xlu0 %273 }
 0x477   :  { %v284_v17 = vrot.slane %v274_v14, %v644_v12 }
 0x478   :  { %v257_v15 = vpop.xlane.xlu1 %256 }
 0x479   :  { %v293_v16 = vadd.f32 %v280_v13, %v257_v15 }
 0x47b   :  { %v297_v18 = vsel %vm55_vm8, %v293_v16, -9e+15 }
 0x47c   :  { %v260_v19 = vpop.xlane.xlu1 %259  ;;  %v300_v20 = vsel %vm299_vm9, %v297_v18, -inf }
 0x47d   :  { %v294_v21 = vadd.f32 %v284_v17, %v260_v19  ;;  %301 = vmax.xlane.f32.xlu1 %v300_v20 }
 0x47f   :  { %v298_v24 = vsel %vm55_vm8, %v294_v21, -9e+15 }
 0x480   :  { %v303_v25 = vsel %vm299_vm9, %v298_v24, -inf }
 0x481   :  { %304 = vmax.xlane.f32.xlu1 %v303_v25 }
 0x50a   :  { %v302_v26 = vpop.xlane.xlu1 %301 }
 0x50b   :  { %v306_v27 = vsub.f32 %v297_v18, %v302_v26 }
 0x50d   :  { %v308_v28 = vmul.f32 1.442695, %v306_v27 }
 0x50e   :  { %v305_v29 = vpop.xlane.xlu1 %304 }
 0x50f   :  { %478 = vpow2.f32 %v308_v28  ;;  %v307_v9 = vsub.f32 %v298_v24, %v305_v29 }
 0x511   :  { %v310_v30 = vmul.f32 1.442695, %v307_v9 }
 0x513   :  { %480 = vpow2.f32 %v310_v30 }
 0x519   :  { %v479_v31 = vpop.eup %478 }
 0x51a   :  { %322 = vperm.xlu1 %464, %v479_v31   ;;  %v312_v35 = vsel %vm299_vm9, %v479_v31, 0.0 }
 0x51d   :  { %v481_v12 = vpop.eup %480 }
 0x51e   :  { %466 = vset.pattern.permute.xlu1 %v568_v32  ;;  %327 = vperm.xlu0 %465, %v481_v12   ;;  %v315_v36 = vsel %vm299_vm9, %v481_v12, 0.0 }
 0x51f   :  { %341 = vperm.xlu1 %466, %v479_v31  }
 0x522   :  { %469 = vset.pattern.permute.xlu0 %v569_v33 }
 0x523   :  { %467 = vset.pattern.permute.xlu1 %v569_v33  ;;  %365 = vperm.xlu0 %469, %v481_v12  }
 0x524   :  { %361 = vperm.xlu1 %467, %v479_v31  }
 0x527   :  { %471 = vset.pattern.permute.xlu0 %v570_v34 }
 0x528   :  { %468 = vset.pattern.permute.xlu1 %v568_v32 }
 0x548   :  { %313 = vadd.xlane.f32.xlu1 %v312_v35 }
 0x559   :  { %345 = vperm.xlu1 %468, %v481_v12  }
 0x55d   :  { %470 = vset.pattern.permute.xlu1 %v570_v34 }
 0x55e   :  { %381 = vperm.xlu1 %470, %v479_v31  }
 0x582   :  { %316 = vadd.xlane.f32.xlu1 %v315_v36 }
 0x593   :  { %385 = vperm.xlu1 %470, %v481_v12  }
 0x599   :  { %v323_v37 = vpop.permute.xlu1 %322 }
 0x59a   :  { %v338_v48 = vmul.f32 %v333_v43, %v323_v37 }
 0x59d   :  { %v328_v59 = vpop.permute.xlu0 %327 }
 0x59e   :  { %v342_v38 = vpop.permute.xlu1 %341  ;;  %v339_v1 = vmul.f32 %v337_v8, %v328_v59 }
 0x59f   :  { %v356_v44 = vmul.f32 %v351_v42, %v342_v38 }
 0x5a1   :  { %v358_v50 = vadd.f32 %v356_v44, %v338_v48 }
 0x5a2   :  { %v366_v61 = vpop.permute.xlu0 %365 }
 0x5a3   :  { %v362_v39 = vpop.permute.xlu1 %361  ;;  %v377_v6 = vmul.f32 %v375_v2, %v366_v61 }
 0x5a4   :  { %v376_v49 = vmul.f32 %v371_v45, %v362_v39 }
 0x5a6   :  { %v378_v53 = vadd.f32 %v376_v49, %v358_v50 }
 0x5d5   :  { %v314_v41 = vpop.xlane.xlu1 %313 }
 0x5d6   :  { %482 = vrcp.f32 %v314_v41 }
 0x5d9   :  { %v346_v47 = vpop.permute.xlu1 %345 }
 0x5da   :  { %v357_v62 = vmul.f32 %v355_v60, %v346_v47 }
 0x5dc   :  { %v359_v3 = vadd.f32 %v357_v62, %v339_v1 }
 0x5dd   :  { %v382_v52 = vpop.permute.xlu1 %381 }
 0x5de   :  { %v396_v54 = vmul.f32 %v391_v51, %v382_v52  ;;  %v379_v10 = vadd.f32 %v377_v6, %v359_v3 }
 0x5e0   :  { %v483_v55 = vpop.eup %482  ;;  %v398_v56 = vadd.f32 %v396_v54, %v378_v53 }
 0x5e2   :  { %v400_v57 = vmul.f32 %v483_v55, %v398_v56 }
 0x5e4   :  { %v402_v58 = vmax.f32 %v400_v57, 0.0 }
 0x5e6   :  { %404 = vst [vmem:[#allocation7] sm:$0xf] %v402_v58 }
 0x60f   :  { %v317_v0 = vpop.xlane.xlu1 %316 }
 0x610   :  { %484 = vrcp.f32 %v317_v0 }
 0x613   :  { %v386_v5 = vpop.permute.xlu1 %385 }
 0x614   :  { %v397_v7 = vmul.f32 %v395_v4, %v386_v5 }
 0x616   :  { %v399_v11 = vadd.f32 %v397_v7, %v379_v10 }
 0x61a   :  { %v485_v13 = vpop.eup %484 }
 0x61b   :  { %v401_v23 = vmul.f32 %v485_v13, %v399_v11 }
 0x61d   :  { %v403_v22 = vmax.f32 %v401_v23, 0.0 }
 0x61f   :  { %405 = vst [vmem:[#allocation7 + $0x4] sm:$0xf] %v403_v22 }
 0x620   :  { %541 = shalt.err (!%p538_p6)
}
 0x621   :  { %s542_s27 = scalar_lea.hbm %s724_s5, 128 }
 0x622   :  { %p543_p7 = scmp.ne.s32.totalorder %s724_s5, %s542_s27  ;;  %p546_p8 = scmp.lt.u32.totalorder %s542_s27, %s724_s5 }
 0x624   :  { %p548_p9 = pnand %p546_p8, %p543_p7 }
 0x626   :  { %551 = shalt.err (!%p548_p9)
}
 0x627   :  { %417 = dma.vmem_to_hbm [thread:$0]  %s412_s4, 128, %s724_s5, [#allocation4], %s559_s28, %s559_s28, %s560_s29  }
 0x628   :  { %556 = dma.done.wait [#allocation4], 128  }
 0x629   :  { %557 = vsyncadd [#allocation4], 4294967168 }
 0x62a   :  { %421 = vsyncpa [#allocation3], 1 }
 0x62b   :  { %422 = vsyncpa [#allocation6], 1 }
 0x62c   :  { %423 = vsyncpa [#allocation4], 1 }

</bundles_post_ra>
